<compile_context>
chip_gen: v7x
topology: tpu7x:2x2x1
jax: 0.10.0
libtpu: 0.0.40
codegen_flags: <defaults>
</compile_context>

<pallas_src>
import functools

import jax
import jax.numpy as jnp
from jax.experimental import pallas as pl
from jax.experimental.pallas import tpu as pltpu


def _rmsnorm_kernel(x_ref, w_ref, o_ref, *, eps, inv_hidden):
    # Pass 1: sum of squares in f32 (XLU reduce). The f32 copy is only needed
    # for the reduce; do not keep it live for the scale pass.
    xf = x_ref[...].astype(jnp.float32)
    ssq = jnp.sum(xf * xf, axis=-1, keepdims=True)
    inv = jax.lax.rsqrt(ssq * inv_hidden + eps)        # EUP rsqrt; mean = sum * (1/H)
    # Pass 2: re-read the input VMEM block (extra vld is free — HBM-bound) so
    # the upcast + scale + store can fuse per-vreg without a (tm, H) f32 temp.
    o_ref[...] = (x_ref[...].astype(jnp.float32) * inv * w_ref[...]).astype(o_ref.dtype)


def _round_up(x, m):
    return ((x + m - 1) // m) * m


def _vmem_plan():
    """(scratch budget for tiling, vmem_limit_bytes) sized per TPU generation."""
    cap = None
    try:
        cap = int(pltpu.get_tpu_info().vmem_capacity_bytes)
    except Exception:
        cap = None
    if cap is None:
        cap = 64 * 1024 * 1024  # conservative fallback: v7x per-TC VMEM
    if cap > 96 * 1024 * 1024:
        # v5e / v6e: 128 MiB physical VMEM — use it.
        return 80 * 1024 * 1024, 100 * 1024 * 1024
    # v7x: 64 MiB per TensorCore — stay under a 48 MiB scoped limit.
    return 40 * 1024 * 1024, 48 * 1024 * 1024


def _pick_row_tile(n_rows, hidden, in_dtype, budget):
    """Largest row tile that fits the VMEM budget, with >= 2 grid steps
    when possible so v7x's two TensorCores both get work."""
    in_bytes = jnp.dtype(in_dtype).itemsize
    # Double-buffered input block + double-buffered output block
    # (+ ~1 f32 element of transient per-vreg temporaries).
    per_row = 4 * in_bytes * hidden + 4 * hidden
    tile = budget // max(per_row, 1)
    tile = max(32, (tile // 32) * 32)          # sublane multiple for f32/bf16/int8
    tile = min(tile, 2048)                     # diminishing returns past ~2k rows
    if n_rows > 32:
        # Keep at least 2 grid steps: lets the "parallel" axis shard across
        # v7x's two TensorCores; costs one ~0.35us step on v5e/v6e (noise).
        tile = min(tile, _round_up(pl.cdiv(n_rows, 2), 32))
    tile = min(tile, _round_up(n_rows, 32))    # don't allocate far past the array
    return int(tile)


def qwen2_rms_norm(x, weight, eps=1e-6, *, row_tile=None):
    """RMSNorm over the last axis of x, scaled by `weight` (shape (hidden,))."""
    orig_shape = x.shape
    hidden = orig_shape[-1]
    assert weight.shape == (hidden,)

    x2d = x.reshape(-1, hidden)
    n_rows = x2d.shape[0]

    budget, vmem_limit = _vmem_plan()
    if row_tile is None:
        row_tile = _pick_row_tile(n_rows, hidden, x.dtype, budget)

    grid = pl.cdiv(n_rows, row_tile)   # ragged last block masked by Pallas; no pad/slice
    # Pre-cast weight to f32 so no per-step cast is needed in the body.
    w2d = weight.reshape(1, hidden).astype(jnp.float32)

    kernel = functools.partial(
        _rmsnorm_kernel, eps=float(eps), inv_hidden=1.0 / float(hidden)
    )

    in_bytes = jnp.dtype(x.dtype).itemsize
    cost = pl.CostEstimate(
        flops=4 * n_rows * hidden,            # square + reduce + two scale multiplies
        transcendentals=n_rows,               # one rsqrt per row
        bytes_accessed=2 * n_rows * hidden * in_bytes + hidden * 4,
    )

    out2d = pl.pallas_call(
        kernel,
        out_shape=jax.ShapeDtypeStruct((n_rows, hidden), x.dtype),
        grid_spec=pltpu.PrefetchScalarGridSpec(
            num_scalar_prefetch=0,
            grid=(grid,),
            in_specs=[
                pl.BlockSpec((row_tile, hidden), lambda i: (i, 0)),
                pl.BlockSpec((1, hidden), lambda i: (0, 0)),   # constant block: fetched once
            ],
            out_specs=pl.BlockSpec((row_tile, hidden), lambda i: (i, 0)),
        ),
        compiler_params=pltpu.CompilerParams(
            # "parallel" lets v7x shard the row axis across its 2 TensorCores;
            # no-op on single-core v5e/v6e.
            dimension_semantics=("parallel",),
            vmem_limit_bytes=vmem_limit,
        ),
        cost_estimate=cost,
    )(x2d, w2d)

    return out2d.reshape(orig_shape)


def _reference_rmsnorm(x, weight, eps):
    xf = x.astype(jnp.float32)
    var = jnp.mean(xf * xf, axis=-1, keepdims=True)
    y = xf * jax.lax.rsqrt(var + eps) * weight.astype(jnp.float32)
    return y.astype(x.dtype)


if __name__ == "__main__":
    key = jax.random.PRNGKey(0)
    # NOTE: hidden=32 (< 128 lanes) is a tiny correctness-test width; real Qwen2
    # hidden sizes (multiples of 128) get lane-dense unmasked stores.
    batch, seq, hidden = 2, 8, 32
    eps = 1e-6

    x = jax.random.normal(key, (batch, seq, hidden), dtype=jnp.float32)
    # Deterministic parameter init matching nn.Parameter(torch.ones(hidden_size)).
    weight = jnp.ones((hidden,), dtype=jnp.float32)

    out = qwen2_rms_norm(x, weight, eps)
    out = jax.block_until_ready(out)

    ref = _reference_rmsnorm(x, weight, eps)
    assert out.shape == x.shape and out.dtype == x.dtype
    assert jnp.allclose(out, ref, atol=1e-5, rtol=1e-5)

    print("KERNEL_OK")
</pallas_src>

<mosaic_0001>
module attributes {stable_mosaic.version = 11 : i64} {
  func.func @_rmsnorm_kernel(%arg0: i32, %arg1: memref<32x32xf32, #tpu.memory_space<vmem>>, %arg2: memref<1x32xf32, #tpu.memory_space<vmem>>, %arg3: memref<32x32xf32, #tpu.memory_space<vmem>>) attributes {dimension_semantics = [#tpu.dimension_semantics<parallel>], iteration_bounds = array<i64: 1>, scalar_prefetch = 0 : i64, scratch_operands = 0 : i64, tpu.core_type = #tpu.core_type<tc>, window_params = [{transform_indices = @transform_0, window_bounds = array<i64: 32, 32>}, {pipeline_mode = #tpu.pipeline_mode<synchronous>, transform_indices = @transform_1, window_bounds = array<i64: 1, 32>}, {transform_indices = @transform_2, window_bounds = array<i64: 32, 32>}]} {
    %c0 = arith.constant 0 : index
    %c0_0 = arith.constant 0 : index
    %0 = vector.load %arg1[%c0, %c0_0] : memref<32x32xf32, #tpu.memory_space<vmem>>, vector<32x32xf32>
    %1 = arith.mulf %0, %0 : vector<32x32xf32>
    %cst = arith.constant dense<0.000000e+00> : vector<32xf32>
    %2 = vector.multi_reduction <add>, %1, %cst [1] : vector<32x32xf32> to vector<32xf32>
    %3 = vector.shape_cast %2 : vector<32xf32> to vector<32x1xf32>
    %cst_1 = arith.constant 3.125000e-02 : f32
    %4 = vector.broadcast %cst_1 : f32 to vector<32x1xf32>
    %5 = arith.mulf %3, %4 : vector<32x1xf32>
    %cst_2 = arith.constant 9.99999997E-7 : f32
    %6 = vector.broadcast %cst_2 : f32 to vector<32x1xf32>
    %7 = arith.addf %5, %6 : vector<32x1xf32>
    %8 = math.rsqrt %7 : vector<32x1xf32>
    %c0_3 = arith.constant 0 : index
    %c0_4 = arith.constant 0 : index
    %9 = vector.load %arg1[%c0_3, %c0_4] : memref<32x32xf32, #tpu.memory_space<vmem>>, vector<32x32xf32>
    %10 = vector.broadcast %8 : vector<32x1xf32> to vector<32x32xf32>
    %11 = arith.mulf %9, %10 : vector<32x32xf32>
    %c0_5 = arith.constant 0 : index
    %c0_6 = arith.constant 0 : index
    %12 = vector.load %arg2[%c0_5, %c0_6] : memref<1x32xf32, #tpu.memory_space<vmem>>, vector<1x32xf32>
    %13 = vector.broadcast %12 : vector<1x32xf32> to vector<32x32xf32>
    %14 = arith.mulf %11, %13 : vector<32x32xf32>
    %c0_7 = arith.constant 0 : index
    %c0_8 = arith.constant 0 : index
    %15 = vector.load %arg3[%c0_7, %c0_8] : memref<32x32xf32, #tpu.memory_space<vmem>>, vector<32x32xf32>
    tpu.vector_store %arg3[%c0_7, %c0_8], %14 {strides = array<i32>} : memref<32x32xf32, #tpu.memory_space<vmem>>, vector<32x32xf32>,
    return
  }
  func.func @transform_0(%arg0: i32) -> (i32, i32) {
    %c0_i32 = arith.constant 0 : i32
    %c0_i32_0 = arith.constant 0 : i32
    return %arg0, %c0_i32 : i32, i32
  }
  func.func @transform_1(%arg0: i32) -> (i32, i32) {
    %c0_i32 = arith.constant 0 : i32
    %c0_i32_0 = arith.constant 0 : i32
    %c0_i32_1 = arith.constant 0 : i32
    return %c0_i32, %c0_i32_0 : i32, i32
  }
  func.func @transform_2(%arg0: i32) -> (i32, i32) {
    %c0_i32 = arith.constant 0 : i32
    %c0_i32_0 = arith.constant 0 : i32
    return %arg0, %c0_i32 : i32, i32
  }
}

</mosaic_0001>

<bundles_post_ra>
// kernel: tpu_custom_call.1
= control target key start
LH: loop header
LB: loop body
LE: loop exit
PB: predicated region body
PF: predicated region fallthrough
CT: control target
= control target key end

     0   :  { %7 = vsyncpa [#allocation3], 0  ;;  %s216_s0 = inlined_call_operand.hbm [shape: f32[16,32], index: 0, kind: input, shape index: {}]   ;;  %s217_s1 = inlined_call_operand.vmem [shape: f32[1,32], index: 1, kind: input, shape index: {}]   ;;  %s218_s2 = inlined_call_operand.hbm [shape: f32[16,32], index: 2, kind: output, shape index: {}]  }
   0x1   :  { %8 = vsyncpa [#allocation4], 0 }
   0x2   :  { %13 = vsyncadd [#allocation3], 256  ;;  %s156_s9 = smov [#allocation2]   ;;  %s108_s13 = scalar_lea.hbm %s216_s0, 256 }
   0x3   :  { %s14_s10 = sshll.u32 %s156_s9, 4  ;;  %p109_p0 = scmp.ne.s32.totalorder %s216_s0, %s108_s13  ;;  %s15_s10 = int_to_ptr.vmem [resolvable:$true] %s14_s10 }
   0x4   :  { %p112_p1 = scmp.lt.u32.totalorder %s108_s13, %s216_s0 }
   0x6   :  { %p114_p2 = pnand %p112_p1, %p109_p0 }
   0x8   :  { %117 = shalt.err (!%p114_p2)
}
   0x9   :  { %s118_s18 = scalar_lea.vmem %s15_s10, 256  ;;  %s122_s19 = scalar_lea.vmem %s15_s10, 512 }
   0xa   :  { %p119_p3 = scmp.ne.s32.totalorder %s15_s10, %s118_s18  ;;  %p123_p4 = scmp.lt.s32.totalorder %s15_s10, %s15_s10 }
   0xb   :  { %p124_p5 = scmp.lt.s32.totalorder %s122_s19, %s118_s18 }
   0xd   :  { %p125_p6 = por %p124_p5, %p123_p4 }
   0xf   :  { %p126_p7 = pnand %p125_p6, %p119_p3 }
  0x11   :  { %129 = shalt.err (!%p126_p7)
}
  0x12   :  { %s157_s20 = smov 128   ;;  %s158_s21 = smov 8  }
  0x13   :  { %20 = dma.hbm_to_vmem [thread:$0]  %s216_s0, 256, %s15_s10, [#allocation3], %s157_s20, %s157_s20, %s158_s21  }
  0x14   :  { %152 = dma.done.wait [#allocation3], 512  }
  0x15   :  { %153 = vsyncadd [#allocation3], 4294966784  ;;  %v28_v0 = vld [vmem:[#allocation2 + $0x10] sm:$0xff]  ;;  %vm34_vm0 = vcmask 261120   ;;  %v26_v1 = vld [vmem:[#allocation2] sm:$0xff] }
  0x16   :  { %v29_v2 = vld [vmem:[#allocation2 + $0x18] sm:$0xff]  ;;  %v32_v3 = vmul.f32 %v28_v0, %v28_v0  ;;  %v30_v4 = vmul.f32 %v26_v1, %v26_v1  ;;  %v27_v6 = vld [vmem:[#allocation2 + $0x8] sm:$0xff]  ;;  %v95_v25 = vld [vmem:[%s217_s1] ss:$0 sm:$0xff] }
  0x17   :  { %v33_v5 = vmul.f32 %v29_v2, %v29_v2  ;;  %v31_v7 = vmul.f32 %v27_v6, %v27_v6 }
  0x18   :  { %v41_v8 = vsel %vm34_vm0, %v32_v3, 0.0  ;;  %v35_v9 = vsel %vm34_vm0, %v30_v4, 0.0 }
  0x19   :  { %42 = vadd.xlane.f32.xlu1 %v41_v8  ;;  %36 = vadd.xlane.f32.xlu0 %v35_v9  ;;  %v44_v10 = vsel %vm34_vm0, %v33_v5, 0.0  ;;  %v38_v11 = vsel %vm34_vm0, %v31_v7, 0.0 }
  0x1d   :  { %45 = vadd.xlane.f32.xlu1 %v44_v10  ;;  %39 = vadd.xlane.f32.xlu0 %v38_v11 }
  0xa6   :  { %v43_v12 = vpop.xlane.xlu1 %42  ;;  %v37_v13 = vpop.xlane.xlu0 %36 }
  0xa7   :  { %v49_v14 = vmul.f32 0.03125, %v43_v12  ;;  %v47_v15 = vmul.f32 0.03125, %v37_v13 }
  0xa9   :  { %v53_v16 = vadd.f32 1e-06, %v49_v14  ;;  %v51_v17 = vadd.f32 1e-06, %v47_v15 }
  0xaa   :  { %v46_v18 = vpop.xlane.xlu1 %45  ;;  %v40_v19 = vpop.xlane.xlu0 %39 }
  0xab   :  { %100 = vrsqrt.f32 %v53_v16  ;;  %v50_v20 = vmul.f32 0.03125, %v46_v18  ;;  %v48_v21 = vmul.f32 0.03125, %v40_v19 }
  0xac   :  { %102 = vrsqrt.f32 %v51_v17 }
  0xad   :  { %v54_v22 = vadd.f32 1e-06, %v50_v20  ;;  %v52_v23 = vadd.f32 1e-06, %v48_v21 }
  0xaf   :  { %104 = vrsqrt.f32 %v54_v22 }
  0xb0   :  { %106 = vrsqrt.f32 %v52_v23 }
  0xb5   :  { %v101_v24 = vpop.eup %100 }
  0xb6   :  { %v103_v26 = vpop.eup %102  ;;  %v61_v27 = vmul.f32 %v101_v24, %v28_v0 }
  0xb7   :  { %v59_v28 = vmul.f32 %v103_v26, %v26_v1 }
  0xb8   :  { %v72_v29 = vmul.f32 %v95_v25, %v61_v27 }
  0xb9   :  { %v105_v30 = vpop.eup %104  ;;  %v70_v31 = vmul.f32 %v95_v25, %v59_v28 }
  0xba   :  { %v107_v32 = vpop.eup %106  ;;  %76 = vst.msk [vmem:[#allocation5 + $0x10] sm:$0xff] %vm34_vm0, %v72_v29  ;;  %v62_v33 = vmul.f32 %v105_v30, %v29_v2 }
  0xbb   :  { %74 = vst.msk [vmem:[#allocation5] sm:$0xff] %vm34_vm0, %v70_v31  ;;  %v60_v34 = vmul.f32 %v107_v32, %v27_v6 }
  0xbc   :  { %v73_v35 = vmul.f32 %v95_v25, %v62_v33 }
  0xbd   :  { %v71_v36 = vmul.f32 %v95_v25, %v60_v34 }
  0xbe   :  { %77 = vst.msk [vmem:[#allocation5 + $0x18] sm:$0xff] %vm34_vm0, %v73_v35 }
  0xbf   :  { %75 = vst.msk [vmem:[#allocation5 + $0x8] sm:$0xff] %vm34_vm0, %v71_v36 }
  0xc0   :  { %82 = vsyncadd [#allocation4], 256  ;;  %s159_s1 = smov [#allocation5]  }
  0xc1   :  { %s83_s25 = sshll.u32 %s159_s1, 4  ;;  %s84_s25 = int_to_ptr.vmem [resolvable:$true] %s83_s25 }
  0xc2   :  { %s130_s26 = scalar_lea.vmem %s84_s25, 256  ;;  %s134_s27 = scalar_lea.vmem %s84_s25, 512 }
  0xc3   :  { %p131_p8 = scmp.ne.s32.totalorder %s84_s25, %s130_s26  ;;  %p135_p9 = scmp.lt.s32.totalorder %s84_s25, %s84_s25 }
  0xc4   :  { %p136_p10 = scmp.lt.s32.totalorder %s134_s27, %s130_s26 }
  0xc6   :  { %p137_p11 = por %p136_p10, %p135_p9 }
  0xc8   :  { %p138_p12 = pnand %p137_p11, %p131_p8 }
  0xca   :  { %141 = shalt.err (!%p138_p12)
}
  0xcb   :  { %s142_s30 = scalar_lea.hbm %s218_s2, 256 }
  0xcc   :  { %p143_p13 = scmp.ne.s32.totalorder %s218_s2, %s142_s30  ;;  %p146_p0 = scmp.lt.u32.totalorder %s142_s30, %s218_s2 }
  0xce   :  { %p148_p1 = pnand %p146_p0, %p143_p13 }
  0xd0   :  { %151 = shalt.err (!%p148_p1)
}
  0xd1   :  { %89 = dma.vmem_to_hbm [thread:$0]  %s84_s25, 256, %s218_s2, [#allocation4], %s157_s20, %s157_s20, %s158_s21  }
  0xd2   :  { %154 = dma.done.wait [#allocation4], 512  }
  0xd3   :  { %155 = vsyncadd [#allocation4], 4294966784 }
  0xd4   :  { %93 = vsyncpa [#allocation3], 1 }
  0xd5   :  { %94 = vsyncpa [#allocation4], 1 }

</bundles_post_ra>
